<compile_context>
chip_gen: v7x
topology: tpu7x:2x2x1
jax: 0.10.0
libtpu: 0.0.40
codegen_flags: <defaults>
</compile_context>

<pallas_src>
import jax
import jax.numpy as jnp
from jax import lax
from jax.experimental import pallas as pl
from jax.experimental.pallas import tpu as pltpu

_LANES = 128
_SUBLANES = 8


def coxph_loss_kernel(risk_ref, cens_ref, out_ref):
    rows, lanes = risk_ref.shape
    r = risk_ref[...]                      # (rows, 128) f32, zero-padded past n
    c = cens_ref[...]                      # (rows, 128) f32, zero-padded past n

    # F.normalize(risk, p=2, dim=0): padded entries are 0 and contribute nothing.
    sumsq = jnp.sum(r * r, keepdims=True)                     # (1, 1)
    inv_norm = 1.0 / jnp.maximum(jnp.sqrt(sumsq), 1e-12)      # (1, 1)

    # exp(riskmax).  Padded entries give exp(0) = 1, but they live strictly
    # *after* every valid element in the row-major order, so they never enter
    # a valid prefix sum; their likelihood term is killed by censor == 0.
    e = jnp.exp(r * inv_norm)                                 # (rows, 128)

    # ---- intra-row inclusive prefix sum along lanes --------------------------
    # Hillis-Steele scan: 7 pltpu.roll (XLU) + masked adds (VPU), exact f32.
    lane_i = lax.broadcasted_iota(jnp.int32, (rows, lanes), 1)
    cum = e
    s = 1
    while s < lanes:
        shifted = pltpu.roll(cum, shift=s, axis=1)
        cum = cum + jnp.where(lane_i >= s, shifted, 0.0)
        s *= 2
    # cum[i, l] = sum_{k <= l} e[i, k];  cum[i, 127] is the row total.

    # ---- inter-row exclusive prefix sum of the per-row totals ----------------
    # O(rows * log rows) sublane roll scan (replaces the old O(rows^2) mask +
    # 1-column matmul).  Totals are lane-broadcast so all rolls act on full vregs.
    t = cum[:, lanes - 1:lanes]                               # (rows, 1)
    tb = jnp.broadcast_to(t, (rows, lanes))                   # (rows, 128)
    row_i = lax.broadcasted_iota(jnp.int32, (rows, lanes), 0)
    incl = tb
    s = 1
    while s < rows:
        shifted = pltpu.roll(incl, shift=s, axis=0)
        incl = incl + jnp.where(row_i >= s, shifted, 0.0)
        s *= 2
    offsets = incl - tb                                       # exclusive scan

    # Full row-major cumsum of exp(riskmax); strictly positive for every entry.
    log_risk = jnp.log(cum + offsets)

    # censored likelihood; padded censors are 0, so padding contributes nothing.
    censored = (r * inv_norm - log_risk) * c

    num = -jnp.sum(censored, keepdims=True)                   # (1, 1)
    den = jnp.sum((c != 0.0).astype(jnp.float32), keepdims=True)
    # NOTE: den == 0 (all-censored batch) gives inf/nan, matching the PyTorch
    # reference, which also divides by censors.nonzero().size(0).
    out_ref[...] = num / den


def coxph_loss(risk, phase, censors):
    """Pallas implementation of coxph_loss.forward(risk, phase, censors)."""
    del phase  # unused by the reference module
    risk = jnp.asarray(risk, jnp.float32).reshape(-1)
    censors = jnp.asarray(censors, jnp.float32).reshape(-1)   # == censors.resize_(N, 1)
    n = risk.shape[0]

    # Zero-pad up to a multiple of 8*128 so the slab is (rows, 128), rows % 8 == 0.
    # Padding sits at the end of the row-major order, so the kernel needs no mask.
    tile = _SUBLANES * _LANES
    n_pad = ((n + tile - 1) // tile) * tile
    rows = n_pad // _LANES
    risk_slab = jnp.pad(risk, (0, n_pad - n)).reshape(rows, _LANES)
    cens_slab = jnp.pad(censors, (0, n_pad - n)).reshape(rows, _LANES)

    # Scoped-VMEM limit sized to the resident footprint (inputs + a few temps),
    # with generous floor/ceiling so small shapes compile with defaults-ish room.
    slab_bytes = rows * _LANES * 4
    vmem_limit = int(min(96 * 1024 * 1024, max(32 * 1024 * 1024, 12 * slab_bytes)))

    out = pl.pallas_call(
        coxph_loss_kernel,
        out_shape=jax.ShapeDtypeStruct((1, 1), jnp.float32),
        in_specs=[
            pl.BlockSpec(memory_space=pltpu.VMEM),
            pl.BlockSpec(memory_space=pltpu.VMEM),
        ],
        out_specs=pl.BlockSpec(memory_space=pltpu.VMEM),
        compiler_params=pltpu.CompilerParams(vmem_limit_bytes=vmem_limit),
    )(risk_slab, cens_slab)
    return out[0, 0]


def _reference(risk, censors):
    """Pure-JAX reference mirroring the PyTorch semantics."""
    risk = jnp.asarray(risk, jnp.float32).reshape(-1, 1)
    censors = jnp.asarray(censors, jnp.float32).reshape(-1, 1)
    norm = jnp.sqrt(jnp.sum(risk * risk, axis=0, keepdims=True))
    riskmax = risk / jnp.maximum(norm, 1e-12)
    log_risk = jnp.log(jnp.cumsum(jnp.exp(riskmax), axis=0))
    uncensored = riskmax - log_risk
    censored = uncensored * censors
    return -jnp.sum(censored) / jnp.count_nonzero(censors).astype(jnp.float32)


if __name__ == "__main__":
    key = jax.random.PRNGKey(0)

    # Small shape consistent with the module: risk (N, 1), censors (N,).
    N = 8
    risk = jax.random.normal(key, (N, 1), dtype=jnp.float32)
    censors = jnp.array([1.0, 0.0, 1.0, 1.0, 0.0, 1.0, 0.0, 1.0],
                        dtype=jnp.float32)  # at least one event, as the loss requires
    phase = jnp.zeros((N,), dtype=jnp.float32)  # unused

    loss = coxph_loss(risk, phase, censors)
    loss = jax.block_until_ready(loss)
    ref = _reference(risk, censors)
    assert jnp.allclose(loss, ref, rtol=1e-5, atol=1e-5), (loss, ref)

    # Second check spanning multiple 128-lane rows to exercise the inter-row scan.
    N2 = 300
    k1, k2 = jax.random.split(key)
    risk2 = jax.random.normal(k1, (N2, 1), dtype=jnp.float32)
    censors2 = (jax.random.uniform(k2, (N2,)) > 0.5).astype(jnp.float32)
    censors2 = censors2.at[0].set(1.0)  # guarantee a nonzero denominator
    loss2 = jax.block_until_ready(coxph_loss(risk2, phase, censors2))
    ref2 = _reference(risk2, censors2)
    assert jnp.allclose(loss2, ref2, rtol=1e-5, atol=1e-5), (loss2, ref2)

    print("KERNEL_OK")
</pallas_src>

<mosaic_0001>
module attributes {stable_mosaic.version = 11 : i64} {
  func.func @coxph_loss_kernel(%arg0: memref<8x128xf32, #tpu.memory_space<vmem>>, %arg1: memref<8x128xf32, #tpu.memory_space<vmem>>, %arg2: memref<1x1xf32, #tpu.memory_space<vmem>>) attributes {dimension_semantics = [], scalar_prefetch = 0 : i64, scratch_operands = 0 : i64, tpu.core_type = #tpu.core_type<tc>} {
    %c0 = arith.constant 0 : index
    %c0_0 = arith.constant 0 : index
    %0 = vector.load %arg0[%c0, %c0_0] : memref<8x128xf32, #tpu.memory_space<vmem>>, vector<8x128xf32>
    %c0_1 = arith.constant 0 : index
    %c0_2 = arith.constant 0 : index
    %1 = vector.load %arg1[%c0_1, %c0_2] : memref<8x128xf32, #tpu.memory_space<vmem>>, vector<8x128xf32>
    %2 = arith.mulf %0, %0 : vector<8x128xf32>
    %3 = vector.shape_cast %2 : vector<8x128xf32> to vector<1x8x128xf32>
    %cst = arith.constant dense<0.000000e+00> : vector<1xf32>
    %4 = vector.multi_reduction <add>, %3, %cst [1, 2] : vector<1x8x128xf32> to vector<1xf32>
    %5 = vector.shape_cast %4 : vector<1xf32> to vector<1x1x1xf32>
    %6 = vector.extract %5[0, 0, 0] : f32 from vector<1x1x1xf32>
    %7 = vector.broadcast %6 : f32 to vector<1x1xf32>
    %8 = math.sqrt %7 : vector<1x1xf32>
    %cst_3 = arith.constant 9.99999996E-13 : f32
    %9 = vector.broadcast %cst_3 : f32 to vector<1x1xf32>
    %10 = arith.maximumf %8, %9 : vector<1x1xf32>
    %cst_4 = arith.constant 1.000000e+00 : f32
    %11 = vector.broadcast %cst_4 : f32 to vector<1x1xf32>
    %12 = arith.divf %11, %10 : vector<1x1xf32>
    %13 = vector.broadcast %12 : vector<1x1xf32> to vector<8x128xf32>
    %14 = arith.mulf %0, %13 : vector<8x128xf32>
    %15 = math.exp %14 : vector<8x128xf32>
    %16 = tpu.iota {dimensions = array<i32: 1>} : vector<8x128xi32>
    %c1_i32 = arith.constant 1 : i32
    %17 = tpu.dynamic_rotate %15 by %c1_i32 dim 1 : vector<8x128xf32>, i32 -> vector<8x128xf32>
    %c1_i32_5 = arith.constant 1 : i32
    %18 = vector.broadcast %c1_i32_5 : i32 to vector<8x128xi32>
    %19 = arith.cmpi sge, %16, %18 : vector<8x128xi32>
    %cst_6 = arith.constant 0.000000e+00 : f32
    %20 = vector.broadcast %cst_6 : f32 to vector<8x128xf32>
    %21 = arith.select %19, %17, %20 : vector<8x128xi1>, vector<8x128xf32>
    %22 = arith.addf %15, %21 : vector<8x128xf32>
    %c2_i32 = arith.constant 2 : i32
    %23 = tpu.dynamic_rotate %22 by %c2_i32 dim 1 : vector<8x128xf32>, i32 -> vector<8x128xf32>
    %c2_i32_7 = arith.constant 2 : i32
    %24 = vector.broadcast %c2_i32_7 : i32 to vector<8x128xi32>
    %25 = arith.cmpi sge, %16, %24 : vector<8x128xi32>
    %cst_8 = arith.constant 0.000000e+00 : f32
    %26 = vector.broadcast %cst_8 : f32 to vector<8x128xf32>
    %27 = arith.select %25, %23, %26 : vector<8x128xi1>, vector<8x128xf32>
    %28 = arith.addf %22, %27 : vector<8x128xf32>
    %c4_i32 = arith.constant 4 : i32
    %29 = tpu.dynamic_rotate %28 by %c4_i32 dim 1 : vector<8x128xf32>, i32 -> vector<8x128xf32>
    %c4_i32_9 = arith.constant 4 : i32
    %30 = vector.broadcast %c4_i32_9 : i32 to vector<8x128xi32>
    %31 = arith.cmpi sge, %16, %30 : vector<8x128xi32>
    %cst_10 = arith.constant 0.000000e+00 : f32
    %32 = vector.broadcast %cst_10 : f32 to vector<8x128xf32>
    %33 = arith.select %31, %29, %32 : vector<8x128xi1>, vector<8x128xf32>
    %34 = arith.addf %28, %33 : vector<8x128xf32>
    %c8_i32 = arith.constant 8 : i32
    %35 = tpu.dynamic_rotate %34 by %c8_i32 dim 1 : vector<8x128xf32>, i32 -> vector<8x128xf32>
    %c8_i32_11 = arith.constant 8 : i32
    %36 = vector.broadcast %c8_i32_11 : i32 to vector<8x128xi32>
    %37 = arith.cmpi sge, %16, %36 : vector<8x128xi32>
    %cst_12 = arith.constant 0.000000e+00 : f32
    %38 = vector.broadcast %cst_12 : f32 to vector<8x128xf32>
    %39 = arith.select %37, %35, %38 : vector<8x128xi1>, vector<8x128xf32>
    %40 = arith.addf %34, %39 : vector<8x128xf32>
    %c16_i32 = arith.constant 16 : i32
    %41 = tpu.dynamic_rotate %40 by %c16_i32 dim 1 : vector<8x128xf32>, i32 -> vector<8x128xf32>
    %c16_i32_13 = arith.constant 16 : i32
    %42 = vector.broadcast %c16_i32_13 : i32 to vector<8x128xi32>
    %43 = arith.cmpi sge, %16, %42 : vector<8x128xi32>
    %cst_14 = arith.constant 0.000000e+00 : f32
    %44 = vector.broadcast %cst_14 : f32 to vector<8x128xf32>
    %45 = arith.select %43, %41, %44 : vector<8x128xi1>, vector<8x128xf32>
    %46 = arith.addf %40, %45 : vector<8x128xf32>
    %c32_i32 = arith.constant 32 : i32
    %47 = tpu.dynamic_rotate %46 by %c32_i32 dim 1 : vector<8x128xf32>, i32 -> vector<8x128xf32>
    %c32_i32_15 = arith.constant 32 : i32
    %48 = vector.broadcast %c32_i32_15 : i32 to vector<8x128xi32>
    %49 = arith.cmpi sge, %16, %48 : vector<8x128xi32>
    %cst_16 = arith.constant 0.000000e+00 : f32
    %50 = vector.broadcast %cst_16 : f32 to vector<8x128xf32>
    %51 = arith.select %49, %47, %50 : vector<8x128xi1>, vector<8x128xf32>
    %52 = arith.addf %46, %51 : vector<8x128xf32>
    %c64_i32 = arith.constant 64 : i32
    %53 = tpu.dynamic_rotate %52 by %c64_i32 dim 1 : vector<8x128xf32>, i32 -> vector<8x128xf32>
    %c64_i32_17 = arith.constant 64 : i32
    %54 = vector.broadcast %c64_i32_17 : i32 to vector<8x128xi32>
    %55 = arith.cmpi sge, %16, %54 : vector<8x128xi32>
    %cst_18 = arith.constant 0.000000e+00 : f32
    %56 = vector.broadcast %cst_18 : f32 to vector<8x128xf32>
    %57 = arith.select %55, %53, %56 : vector<8x128xi1>, vector<8x128xf32>
    %58 = arith.addf %52, %57 : vector<8x128xf32>
    %59 = vector.extract_strided_slice %58 {offsets = [0, 127], sizes = [8, 1], strides = [1, 1]} : vector<8x128xf32> to vector<8x1xf32>
    %60 = vector.shape_cast %59 : vector<8x1xf32> to vector<8x1xf32>
    %61 = vector.broadcast %60 : vector<8x1xf32> to vector<8x128xf32>
    %62 = tpu.iota {dimensions = array<i32: 0>} : vector<8x128xi32>
    %c1_i32_19 = arith.constant 1 : i32
    %63 = tpu.dynamic_rotate %61 by %c1_i32_19 dim 0 : vector<8x128xf32>, i32 -> vector<8x128xf32>
    %c1_i32_20 = arith.constant 1 : i32
    %64 = vector.broadcast %c1_i32_20 : i32 to vector<8x128xi32>
    %65 = arith.cmpi sge, %62, %64 : vector<8x128xi32>
    %cst_21 = arith.constant 0.000000e+00 : f32
    %66 = vector.broadcast %cst_21 : f32 to vector<8x128xf32>
    %67 = arith.select %65, %63, %66 : vector<8x128xi1>, vector<8x128xf32>
    %68 = arith.addf %61, %67 : vector<8x128xf32>
    %c2_i32_22 = arith.constant 2 : i32
    %69 = tpu.dynamic_rotate %68 by %c2_i32_22 dim 0 : vector<8x128xf32>, i32 -> vector<8x128xf32>
    %c2_i32_23 = arith.constant 2 : i32
    %70 = vector.broadcast %c2_i32_23 : i32 to vector<8x128xi32>
    %71 = arith.cmpi sge, %62, %70 : vector<8x128xi32>
    %cst_24 = arith.constant 0.000000e+00 : f32
    %72 = vector.broadcast %cst_24 : f32 to vector<8x128xf32>
    %73 = arith.select %71, %69, %72 : vector<8x128xi1>, vector<8x128xf32>
    %74 = arith.addf %68, %73 : vector<8x128xf32>
    %c4_i32_25 = arith.constant 4 : i32
    %75 = tpu.dynamic_rotate %74 by %c4_i32_25 dim 0 : vector<8x128xf32>, i32 -> vector<8x128xf32>
    %c4_i32_26 = arith.constant 4 : i32
    %76 = vector.broadcast %c4_i32_26 : i32 to vector<8x128xi32>
    %77 = arith.cmpi sge, %62, %76 : vector<8x128xi32>
    %cst_27 = arith.constant 0.000000e+00 : f32
    %78 = vector.broadcast %cst_27 : f32 to vector<8x128xf32>
    %79 = arith.select %77, %75, %78 : vector<8x128xi1>, vector<8x128xf32>
    %80 = arith.addf %74, %79 : vector<8x128xf32>
    %81 = arith.subf %80, %61 : vector<8x128xf32>
    %82 = arith.addf %58, %81 : vector<8x128xf32>
    %83 = math.log %82 : vector<8x128xf32>
    %84 = vector.broadcast %12 : vector<1x1xf32> to vector<8x128xf32>
    %85 = arith.mulf %0, %84 : vector<8x128xf32>
    %86 = arith.subf %85, %83 : vector<8x128xf32>
    %87 = arith.mulf %86, %1 : vector<8x128xf32>
    %88 = vector.shape_cast %87 : vector<8x128xf32> to vector<1x8x128xf32>
    %cst_28 = arith.constant dense<0.000000e+00> : vector<1xf32>
    %89 = vector.multi_reduction <add>, %88, %cst_28 [1, 2] : vector<1x8x128xf32> to vector<1xf32>
    %90 = vector.shape_cast %89 : vector<1xf32> to vector<1x1x1xf32>
    %91 = vector.extract %90[0, 0, 0] : f32 from vector<1x1x1xf32>
    %92 = vector.broadcast %91 : f32 to vector<1x1xf32>
    %cst_29 = arith.constant 0.000000e+00 : f32
    %93 = vector.broadcast %cst_29 : f32 to vector<1x1xf32>
    %94 = arith.subf %93, %92 : vector<1x1xf32>
    %cst_30 = arith.constant 0.000000e+00 : f32
    %95 = vector.broadcast %cst_30 : f32 to vector<8x128xf32>
    %96 = arith.cmpf one, %1, %95 : vector<8x128xf32>
    %97 = arith.extui %96 : vector<8x128xi1> to vector<8x128xi32>
    %98 = arith.sitofp %97 : vector<8x128xi32> to vector<8x128xf32>
    %99 = vector.shape_cast %98 : vector<8x128xf32> to vector<1x8x128xf32>
    %cst_31 = arith.constant dense<0.000000e+00> : vector<1xf32>
    %100 = vector.multi_reduction <add>, %99, %cst_31 [1, 2] : vector<1x8x128xf32> to vector<1xf32>
    %101 = vector.shape_cast %100 : vector<1xf32> to vector<1x1x1xf32>
    %102 = vector.extract %101[0, 0, 0] : f32 from vector<1x1x1xf32>
    %103 = vector.broadcast %102 : f32 to vector<1x1xf32>
    %104 = arith.divf %94, %103 : vector<1x1xf32>
    %c0_32 = arith.constant 0 : index
    %c0_33 = arith.constant 0 : index
    %105 = vector.load %arg2[%c0_32, %c0_33] : memref<1x1xf32, #tpu.memory_space<vmem>>, vector<1x1xf32>
    tpu.vector_store %arg2[%c0_32, %c0_33], %104 {strides = array<i32>} : memref<1x1xf32, #tpu.memory_space<vmem>>, vector<1x1xf32>,
    return
  }
}

</mosaic_0001>

<bundles_post_ra>
// kernel: tpu_custom_call.1
= control target key start
LH: loop header
LB: loop body
LE: loop exit
PB: predicated region body
PF: predicated region fallthrough
CT: control target
= control target key end

     0   :  { %7 = vsyncpa [#allocation3], 0  ;;  %s338_s0 = inlined_call_operand.hbm [shape: f32[8,128], index: 0, kind: input, shape index: {}]   ;;  %s339_s1 = inlined_call_operand.hbm [shape: f32[8,128], index: 1, kind: input, shape index: {}]   ;;  %s340_s2 = inlined_call_operand.hbm [shape: f32[1,1], index: 2, kind: output, shape index: {}]  }
   0x1   :  { %8 = vsyncpa [#allocation6], 0 }
   0x2   :  { %9 = vsyncpa [#allocation4], 0  ;;  %s271_s9 = smov [#allocation2]   ;;  %s272_s11 = smov [#allocation5]  }
   0x3   :  { %s16_s10 = sshll.u32 %s271_s9, 4  ;;  %s26_s12 = sshll.u32 %s272_s11, 4  ;;  %s17_s10 = int_to_ptr.vmem [resolvable:$true] %s16_s10  ;;  %s27_s12 = int_to_ptr.vmem [resolvable:$true] %s26_s12 }
   0x4   :  { %s199_s15 = scalar_lea.hbm %s338_s0, 128 }
   0x5   :  { %p200_p0 = scmp.ne.s32.totalorder %s338_s0, %s199_s15  ;;  %p203_p1 = scmp.lt.u32.totalorder %s199_s15, %s338_s0 }
   0x7   :  { %p205_p2 = pnand %p203_p1, %p200_p0 }
   0x9   :  { %208 = shalt.err (!%p205_p2)
}
   0xa   :  { %s209_s20 = scalar_lea.vmem %s17_s10, 128  ;;  %p214_p4 = scmp.lt.s32.totalorder %s17_s10, %s17_s10 }
   0xb   :  { %p210_p3 = scmp.ne.s32.totalorder %s17_s10, %s209_s20  ;;  %p215_p5 = scmp.lt.s32.totalorder %s209_s20, %s209_s20 }
   0xd   :  { %p216_p6 = por %p215_p5, %p214_p4 }
   0xf   :  { %p217_p7 = pnand %p216_p6, %p210_p3 }
  0x11   :  { %220 = shalt.err (!%p217_p7)
}
  0x12   :  { %19 = dma.hbm_to_vmem [thread:$0]  %s338_s0, 128, %s17_s10, [#allocation3]  }
  0x13   :  { %s221_s25 = scalar_lea.hbm %s339_s1, 128 }
  0x14   :  { %p222_p8 = scmp.ne.s32.totalorder %s339_s1, %s221_s25  ;;  %p225_p9 = scmp.lt.u32.totalorder %s221_s25, %s339_s1 }
  0x16   :  { %p227_p10 = pnand %p225_p9, %p222_p8 }
  0x18   :  { %230 = shalt.err (!%p227_p10)
}
  0x19   :  { %s231_s30 = scalar_lea.vmem %s27_s12, 128  ;;  %p236_p12 = scmp.lt.s32.totalorder %s27_s12, %s27_s12 }
  0x1a   :  { %p232_p11 = scmp.ne.s32.totalorder %s27_s12, %s231_s30  ;;  %p237_p13 = scmp.lt.s32.totalorder %s231_s30, %s231_s30 }
  0x1c   :  { %p238_p0 = por %p237_p13, %p236_p12 }
  0x1e   :  { %p239_p1 = pnand %p238_p0, %p232_p11 }
  0x20   :  { %242 = shalt.err (!%p239_p1)
}
  0x21   :  { %29 = dma.hbm_to_vmem [thread:$0]  %s339_s1, 128, %s27_s12, [#allocation6]  }
  0x22   :  { %265 = dma.done.wait [#allocation3], 128  }
  0x23   :  { %266 = vsyncadd [#allocation3], 4294967168 }
  0x24   :  { %267 = dma.done.wait [#allocation6], 128  }
  0x25   :  { %268 = vsyncadd [#allocation6], 4294967168  ;;  %v36_v0 = vld [vmem:[#allocation2] sm:$0xff]  ;;  %s273_s1 = smov 1   ;;  %v62_v20 = vlaneseq  ;;  %s274_s5 = smov 2   ;;  %v279_v37 = vmov 127  }
  0x26   :  { %v38_v1 = vmul.f32 %v36_v0, %v36_v0  ;;  %s275_s6 = smov 4   ;;  %s276_s7 = smov 8   ;;  %187 = vset.pattern.permute.xlu1 %v279_v37  ;;  %188 = vset.pattern.permute.xlu0 %v279_v37  ;;  %v37_v44 = vld [vmem:[#allocation5] sm:$0xff]  ;;  %v281_v45 = vmov 0.0   ;;  %vm150_vm13 = vcmask 0  }
  0x27   :  { %v63_v21 = vand.u32 127, %v62_v20  ;;  %s277_s8 = smov 16   ;;  %s278_s9 = smov 32   ;;  %vm135_vm9 = vcmp.ne.f32.partialorder %v37_v44, 0.0  ;;  %v105_v47 = vshrl.u32 %v62_v20, 7 }
  0x28   :  { %39 = vadd.xlane.f32.xlu0 %v38_v1  ;;  %s280_s10 = smov 64   ;;  %v168_v46 = vsel %vm135_vm9, 1.0, %v281_v45  ;;  %s282_s13 = smov [#allocation7]  }
  0x29   :  { %vm66_vm2 = vcmp.ge.s32.totalorder %v63_v21, 1  ;;  %vm71_vm3 = vcmp.ge.s32.totalorder %v63_v21, 2  ;;  %vm76_vm4 = vcmp.ge.s32.totalorder %v63_v21, 4  ;;  %vm81_vm5 = vcmp.ge.s32.totalorder %v63_v21, 8  ;;  %s158_s14 = sshll.u32 %s282_s13, 4  ;;  %s159_s14 = int_to_ptr.vmem [resolvable:$true] %s158_s14 }
  0x2a   :  { %vm86_vm6 = vcmp.ge.s32.totalorder %v63_v21, 16  ;;  %vm91_vm7 = vcmp.ge.s32.totalorder %v63_v21, 32  ;;  %vm96_vm8 = vcmp.ge.s32.totalorder %v63_v21, 64  ;;  %vm107_vm10 = vcmp.ge.s32.totalorder %v105_v47, 1  ;;  %s243_s15 = scalar_lea.vmem %s159_s14, 16  ;;  %s247_s16 = scalar_lea.vmem %s159_s14, 32 }
  0x2b   :  { %vm111_vm11 = vcmp.ge.s32.totalorder %v105_v47, 2  ;;  %vm115_vm12 = vcmp.ge.s32.totalorder %v105_v47, 4  ;;  %p244_p2 = scmp.ne.s32.totalorder %s159_s14, %s243_s15  ;;  %p248_p3 = scmp.lt.s32.totalorder %s159_s14, %s159_s14 }
  0x2c   :  { %p249_p4 = scmp.lt.s32.totalorder %s247_s16, %s243_s15 }
  0x2e   :  { %p250_p5 = por %p249_p4, %p248_p3 }
  0x30   :  { %p251_p6 = pnand %p250_p5, %p244_p2 }
  0xb5   :  { %v40_v2 = vpop.xlane.xlu0 %39 }
  0xb6   :  { %v41_v3 = vrot.slane %v40_v2, 4 }
  0xb8   :  { %v42_v4 = vadd.f32 %v41_v3, %v40_v2 }
  0xba   :  { %v43_v5 = vrot.slane %v42_v4, 2 }
  0xbc   :  { %v44_v6 = vadd.f32 %v43_v5, %v42_v4 }
  0xbe   :  { %v45_v7 = vrot.slane %v44_v6, 1 }
  0xc0   :  { %v46_v8 = vadd.f32 %v45_v7, %v44_v6 }
  0xc2   :  { %169 = vpush %v46_v8 }
  0xf3   :  { %s170_s4 = spop %169 }
  0xf4   :  { %v48_v9 = vstv %s170_s4 }
  0xf5   :  { %189 = vrsqrt.f32 %v48_v9  ;;  %vm51_vm0 = vcmp.eq.f32.partialorder %v48_v9, inf  ;;  %v54_v12 = vand.u32 2147483648, %v48_v9  ;;  %vm53_vm1 = vcmp.eq.f32.partialorder %v48_v9, 0.0 }
  0xff   :  { %v190_v10 = vpop.eup %189 }
 0x100   :  { %v50_v11 = vmul.f32 %v190_v10, %v48_v9 }
 0x102   :  { %v52_v13 = vsel %vm51_vm0, %v48_v9, %v50_v11 }
 0x103   :  { %v55_v14 = vsel %vm53_vm1, %v54_v12, %v52_v13 }
 0x104   :  { %v56_v15 = vmax.f32 %v55_v14, 1e-12 }
 0x106   :  { %191 = vrcp.f32 %v56_v15 }
 0x110   :  { %v192_v16 = vpop.eup %191 }
 0x111   :  { %v322_v17 = vmul.f32 %v192_v16, %v36_v0 }
 0x113   :  { %v60_v18 = vmul.f32 1.442695, %v322_v17 }
 0x115   :  { %193 = vpow2.f32 %v60_v18 }
 0x11f   :  { %v194_v19 = vpop.eup %193 }
 0x120   :  { %64 = vrot.lane.b32.xlu0 %v194_v19, %s273_s1 }
 0x192   :  { %v65_v22 = vpop.permute.xlu0 %64 }
 0x193   :  { %v67_v23 = vsel %vm66_vm2, %v65_v22, 0.0 }
 0x194   :  { %v68_v24 = vadd.f32 %v194_v19, %v67_v23 }
 0x196   :  { %69 = vrot.lane.b32.xlu1 %v68_v24, %s274_s5 }
 0x208   :  { %v70_v25 = vpop.permute.xlu1 %69 }
 0x209   :  { %v72_v26 = vsel %vm71_vm3, %v70_v25, 0.0 }
 0x20a   :  { %v73_v27 = vadd.f32 %v72_v26, %v68_v24 }
 0x20c   :  { %74 = vrot.lane.b32.xlu1 %v73_v27, %s275_s6 }
 0x27e   :  { %v75_v28 = vpop.permute.xlu1 %74 }
 0x27f   :  { %v77_v29 = vsel %vm76_vm4, %v75_v28, 0.0 }
 0x280   :  { %v78_v30 = vadd.f32 %v77_v29, %v73_v27 }
 0x282   :  { %79 = vrot.lane.b32.xlu1 %v78_v30, %s276_s7 }
 0x2f4   :  { %v80_v31 = vpop.permute.xlu1 %79 }
 0x2f5   :  { %v82_v32 = vsel %vm81_vm5, %v80_v31, 0.0 }
 0x2f6   :  { %v83_v33 = vadd.f32 %v82_v32, %v78_v30 }
 0x2f8   :  { %84 = vrot.lane.b32.xlu1 %v83_v33, %s277_s8 }
 0x36a   :  { %v85_v34 = vpop.permute.xlu1 %84 }
 0x36b   :  { %v87_v35 = vsel %vm86_vm6, %v85_v34, 0.0 }
 0x36c   :  { %v88_v36 = vadd.f32 %v87_v35, %v83_v33 }
 0x36e   :  { %89 = vrot.lane.b32.xlu1 %v88_v36, %s278_s9 }
 0x3e0   :  { %v90_v38 = vpop.permute.xlu1 %89 }
 0x3e1   :  { %v92_v39 = vsel %vm91_vm7, %v90_v38, 0.0 }
 0x3e2   :  { %v93_v40 = vadd.f32 %v92_v39, %v88_v36 }
 0x3e4   :  { %94 = vrot.lane.b32.xlu1 %v93_v40, %s280_s10 }
 0x456   :  { %v95_v41 = vpop.permute.xlu1 %94 }
 0x457   :  { %v97_v42 = vsel %vm96_vm8, %v95_v41, 0.0 }
 0x458   :  { %v98_v43 = vadd.f32 %v97_v42, %v93_v40 }
 0x45a   :  { %101 = vperm.xlu1 %187, %v98_v43  }
 0x47e   :  { %138 = vadd.xlane.f32.xlu1 %v168_v46 }
 0x4d9   :  { %v102_v48 = vpop.permute.xlu1 %101 }
 0x4da   :  { %v106_v49 = vrot.slane %v102_v48, 7 }
 0x4dc   :  { %v108_v50 = vsel %vm107_vm10, %v106_v49, 0.0 }
 0x4dd   :  { %v109_v51 = vadd.f32 %v108_v50, %v102_v48 }
 0x4df   :  { %v110_v52 = vrot.slane %v109_v51, 6 }
 0x4e1   :  { %v112_v53 = vsel %vm111_vm11, %v110_v52, 0.0 }
 0x4e2   :  { %v113_v54 = vadd.f32 %v112_v53, %v109_v51 }
 0x4e4   :  { %v114_v55 = vrot.slane %v113_v54, 4 }
 0x4e6   :  { %v116_v56 = vsel %vm115_vm12, %v114_v55, 0.0 }
 0x4e7   :  { %v117_v57 = vadd.f32 %v116_v56, %v113_v54 }
 0x4e9   :  { %v118_v58 = vsub.f32 %v117_v57, %v102_v48 }
 0x4eb   :  { %v119_v59 = vadd.f32 %v118_v58, %v98_v43 }
 0x4ed   :  { %195 = vlog2.f32 %v119_v59 }
 0x4f7   :  { %v196_v60 = vpop.eup %195 }
 0x4f8   :  { %v121_v61 = vmul.f32 0.6931472, %v196_v60 }
 0x4fa   :  { %v122_v62 = vsub.f32 %v322_v17, %v121_v61 }
 0x4fc   :  { %v123_v63 = vmul.f32 %v122_v62, %v37_v44 }
 0x4fe   :  { %124 = vadd.xlane.f32.xlu0 %v123_v63 }
 0x50b   :  { %v139_v0 = vpop.xlane.xlu1 %138 }
 0x50c   :  { %v140_v1 = vrot.slane %v139_v0, 4 }
 0x50e   :  { %v141_v2 = vadd.f32 %v140_v1, %v139_v0 }
 0x510   :  { %v142_v3 = vrot.slane %v141_v2, 2 }
 0x512   :  { %v143_v7 = vadd.f32 %v142_v3, %v141_v2 }
 0x514   :  { %v144_v10 = vrot.slane %v143_v7, 1 }
 0x516   :  { %v145_v13 = vadd.f32 %v144_v10, %v143_v7 }
 0x58b   :  { %v125_v4 = vpop.xlane.xlu0 %124 }
 0x58c   :  { %v126_v5 = vrot.slane %v125_v4, 4 }
 0x58e   :  { %v127_v6 = vadd.f32 %v126_v5, %v125_v4 }
 0x590   :  { %v128_v8 = vrot.slane %v127_v6, 2 }
 0x592   :  { %v129_v9 = vadd.f32 %v128_v8, %v127_v6 }
 0x594   :  { %v130_v11 = vrot.slane %v129_v9, 1 }
 0x596   :  { %v131_v12 = vadd.f32 %v130_v11, %v129_v9 }
 0x598   :  { %171 = vpush %v131_v12 }
 0x599   :  { %173 = vpush %v145_v13 }
 0x5c9   :  { %s172_s11 = spop %171 }
 0x5ca   :  { %s174_s12 = spop %173  ;;  %v133_v15 = vstv %s172_s11 }
 0x5cb   :  { %v147_v14 = vstv %s174_s12  ;;  %v134_v16 = vsub.f32 0.0, %v133_v15 }
 0x5cc   :  { %197 = vrcp.f32 %v147_v14 }
 0x5d6   :  { %v198_v17 = vpop.eup %197 }
 0x5d7   :  { %v149_v18 = vmul.f32 %v198_v17, %v134_v16 }
 0x5d9   :  { %151 = vst.msk [vmem:[#allocation7] sm:$0x1] %vm150_vm13, %v149_v18 }
 0x5da   :  { %254 = shalt.err (!%p251_p6)
}
 0x5db   :  { %s255_s19 = scalar_lea.hbm %s340_s2, 16 }
 0x5dc   :  { %p256_p7 = scmp.ne.s32.totalorder %s340_s2, %s255_s19  ;;  %p259_p8 = scmp.lt.u32.totalorder %s255_s19, %s340_s2 }
 0x5de   :  { %p261_p9 = pnand %p259_p8, %p256_p7 }
 0x5e0   :  { %264 = shalt.err (!%p261_p9)
}
 0x5e1   :  { %161 = dma.vmem_to_hbm [thread:$0]  %s159_s14, 16, %s340_s2, [#allocation4]  }
 0x5e2   :  { %269 = dma.done.wait [#allocation4], 16  }
 0x5e3   :  { %270 = vsyncadd [#allocation4], 4294967280 }
 0x5e4   :  { %165 = vsyncpa [#allocation3], 1 }
 0x5e5   :  { %166 = vsyncpa [#allocation6], 1 }
 0x5e6   :  { %167 = vsyncpa [#allocation4], 1 }

</bundles_post_ra>
